<compile_context>
chip_gen: v5e
topology: v5e:2x2
jax: 0.10.0
libtpu: 0.0.40
codegen_flags: <defaults>
</compile_context>

<pallas_src>
import jax
import jax.numpy as jnp
from jax import lax
from jax.experimental import pallas as pl
from jax.experimental.pallas import tpu as pltpu

_EPS = 1e-12           # F.normalize default eps (clamp applied to the norm)
_EPS2 = _EPS * _EPS    # clamp on the squared norm for the fused rsqrt form


def _round_up(x, m):
    return (x + m - 1) // m * m


def _normalize_rows_kernel(w_ref, o_ref):
    # One-shot: L2-normalize each row of W, emit bf16 for the MXU.
    w = w_ref[...].astype(jnp.float32)
    inv = lax.rsqrt(jnp.maximum(jnp.sum(w * w, axis=1, keepdims=True), _EPS2))
    o_ref[...] = (w * inv).astype(o_ref.dtype)


def _cosine_kernel(x_ref, wn_ref, o_ref):
    # x changes every forward, so its normalization stays in-kernel.
    x = x_ref[...].astype(jnp.float32)
    inv = lax.rsqrt(jnp.maximum(jnp.sum(x * x, axis=1, keepdims=True), _EPS2))
    x_n = (x * inv).astype(jnp.bfloat16)
    # Contract over C of both operands directly (W stays in native (N, C)
    # layout -> no transpose / relayout before the MXU push).
    cosine = lax.dot_general(
        x_n, wn_ref[...],
        dimension_numbers=(((1,), (1,)), ((), ())),
        preferred_element_type=jnp.float32)
    o_ref[...] = cosine.astype(o_ref.dtype)


def normalize_head_weight(head_weight, *, tn=None):
    """Pre-normalize the static NormedLinear weight once.

    Returns (row-normalized bf16 W padded to a lane-dense multiple of the
    N tile, padded_N, tn). Done once per parameter update, not per forward.
    """
    N, C = head_weight.shape
    if tn is None:
        tn = 256 if N > 128 else 128   # >=256 feeds the v6e/v7x 256-wide MXU
    padded_N = _round_up(N, tn)
    w = jnp.pad(head_weight.astype(jnp.float32), ((0, padded_N - N), (0, 0)))
    w_n = pl.pallas_call(
        _normalize_rows_kernel,
        out_shape=jax.ShapeDtypeStruct((padded_N, C), jnp.bfloat16),
        grid=(padded_N // tn,),
        in_specs=[pl.BlockSpec((tn, C), lambda j: (j, 0))],
        out_specs=pl.BlockSpec((tn, C), lambda j: (j, 0)),
        compiler_params=pltpu.CompilerParams(
            dimension_semantics=("parallel",)),
    )(w)
    return w_n, padded_N, tn


def prompt_learner_forward(x, w_n_padded, num_classes, tn):
    """PromptLearner.forward(x): cosine similarities against the normed head."""
    B, C = x.shape
    padded_N, C2 = w_n_padded.shape
    assert C == C2 and padded_N % tn == 0

    # Tile B; keep C whole per tile so each row norm is computed locally.
    tb = 256 if B > 256 else _round_up(B, 8)
    padded_B = _round_up(B, tb)
    x_p = x if padded_B == B else jnp.pad(x, ((0, padded_B - B), (0, 0)))

    out = pl.pallas_call(
        _cosine_kernel,
        out_shape=jax.ShapeDtypeStruct((padded_B, padded_N), jnp.float32),
        grid=(padded_B // tb, padded_N // tn),
        in_specs=[
            # x block index is independent of j -> stays resident in VMEM
            # while W tiles stream along the N axis.
            pl.BlockSpec((tb, C), lambda i, j: (i, 0)),
            pl.BlockSpec((tn, C), lambda i, j: (j, 0)),
        ],
        out_specs=pl.BlockSpec((tb, tn), lambda i, j: (i, j)),
        compiler_params=pltpu.CompilerParams(
            dimension_semantics=("parallel", "parallel")),
    )(x_p, w_n_padded)
    return out[:B, :num_classes]


def trunc_normal(key, shape, std=0.02, dtype=jnp.float32):
    # Matches torch trunc_normal_ defaults: mean=0, std=std, cut at +/-2*std.
    return jax.random.truncated_normal(key, -2.0, 2.0, shape, dtype) * std


if __name__ == "__main__":
    # Small config consistent with the module's __init__:
    num_classes = 16
    prompt_length = 4
    prompt_depth = 2
    prompt_channels = 32   # hidden dim
    batch = 8

    key = jax.random.PRNGKey(0)
    k_x, k_w, k_p = jax.random.split(key, 3)

    # head.weight: (num_classes, prompt_channels); the NormedLinear uniform/
    # renorm init is overwritten by trunc_normal_ in __init__.
    head_weight = trunc_normal(k_w, (num_classes, prompt_channels))
    # Prompt_Tokens exists as a parameter but is unused in forward().
    prompt_tokens = trunc_normal(k_p, (prompt_depth, prompt_length, prompt_channels))
    # TODO(synk): tokens_proj (merge_prompt=True branch) never participates in forward(); omitted.

    x = jax.random.normal(k_x, (batch, prompt_channels), dtype=jnp.float32)

    # Static weight: normalized once, hoisted out of the per-forward hot path.
    w_n, padded_N, tn = normalize_head_weight(head_weight)

    out = prompt_learner_forward(x, w_n, num_classes, tn)
    out = jax.block_until_ready(out)

    # Reference check in plain JAX (pure f32).
    def ref(x, w, eps=1e-12):
        xn = x / jnp.maximum(jnp.linalg.norm(x, axis=1, keepdims=True), eps)
        wn = w / jnp.maximum(jnp.linalg.norm(w, axis=1, keepdims=True), eps)
        return xn @ wn.T

    expected = ref(x, head_weight)
    assert out.shape == (batch, num_classes)
    # bf16 MXU inputs -> relaxed tolerance vs the f32 reference.
    err = float(jnp.max(jnp.abs(out - expected)))
    assert jnp.allclose(out, expected, atol=2e-2, rtol=0.0), err

    print("KERNEL_OK")
</pallas_src>

<mosaic_0001>
module attributes {stable_mosaic.version = 11 : i64} {
  func.func @_normalize_rows_kernel(%arg0: i32, %arg1: memref<128x32xf32, #tpu.memory_space<vmem>>, %arg2: memref<128x32xbf16, #tpu.memory_space<vmem>>) attributes {dimension_semantics = [#tpu.dimension_semantics<parallel>], iteration_bounds = array<i64: 1>, scalar_prefetch = 0 : i64, scratch_operands = 0 : i64, tpu.core_type = #tpu.core_type<tc>, window_params = [{transform_indices = @transform_0, window_bounds = array<i64: 128, 32>}, {transform_indices = @transform_1, window_bounds = array<i64: 128, 32>}]} {
    %c0 = arith.constant 0 : index
    %c0_0 = arith.constant 0 : index
    %0 = vector.load %arg1[%c0, %c0_0] : memref<128x32xf32, #tpu.memory_space<vmem>>, vector<128x32xf32>
    %1 = arith.mulf %0, %0 : vector<128x32xf32>
    %cst = arith.constant dense<0.000000e+00> : vector<128xf32>
    %2 = vector.multi_reduction <add>, %1, %cst [1] : vector<128x32xf32> to vector<128xf32>
    %3 = vector.shape_cast %2 : vector<128xf32> to vector<128x1xf32>
    %cst_1 = arith.constant 1.000000e-24 : f32
    %4 = vector.broadcast %cst_1 : f32 to vector<128x1xf32>
    %5 = arith.maximumf %3, %4 : vector<128x1xf32>
    %6 = math.rsqrt %5 : vector<128x1xf32>
    %7 = vector.broadcast %6 : vector<128x1xf32> to vector<128x32xf32>
    %8 = arith.mulf %0, %7 : vector<128x32xf32>
    %9 = arith.truncf %8 : vector<128x32xf32> to vector<128x32xbf16>
    %c0_2 = arith.constant 0 : index
    %c0_3 = arith.constant 0 : index
    %10 = vector.load %arg2[%c0_2, %c0_3] : memref<128x32xbf16, #tpu.memory_space<vmem>>, vector<128x32xbf16>
    tpu.vector_store %arg2[%c0_2, %c0_3], %9 {strides = array<i32>} : memref<128x32xbf16, #tpu.memory_space<vmem>>, vector<128x32xbf16>,
    return
  }
  func.func @transform_0(%arg0: i32) -> (i32, i32) {
    %c0_i32 = arith.constant 0 : i32
    %c0_i32_0 = arith.constant 0 : i32
    return %arg0, %c0_i32 : i32, i32
  }
  func.func @transform_1(%arg0: i32) -> (i32, i32) {
    %c0_i32 = arith.constant 0 : i32
    %c0_i32_0 = arith.constant 0 : i32
    return %arg0, %c0_i32 : i32, i32
  }
}

</mosaic_0001>

<bundles_post_ra>
// kernel: tpu_custom_call.1
= control target key start
LH: loop header
LB: loop body
LE: loop exit
PB: predicated region body
PF: predicated region fallthrough
CT: control target
= control target key end

     0   :  { %vm40_vm0 = vcmask 261120   ;;  %vm297_vm1 = vcmask 257024   ;;  %s713_s0 = inlined_call_operand.vmem [shape: f32[128,32], index: 0, kind: input, shape index: {}]   ;;  %s714_s1 = inlined_call_operand.vmem [shape: bf16[128,32], index: 1, kind: output, shape index: {}]  }
   0x1   :  { %v363_v0 = vld [vmem:[%s713_s0 + $0x20] sm:$0xff]  ;;  %v368_v1 = vld [vmem:[%s713_s0 + $0x10] sm:$0xff]  ;;  %v384_v6 = vld [vmem:[%s713_s0 + $0x28] sm:$0xff] }
   0x2   :  { %v373_v2 = vld [vmem:[%s713_s0] sm:$0xff]  ;;  %v28_v3 = vmul.f32 %v363_v0, %v363_v0  ;;  %v26_v4 = vmul.f32 %v368_v1, %v368_v1  ;;  %v389_v7 = vld [vmem:[%s713_s0 + $0x18] sm:$0xff]  ;;  %v397_v11 = vld [vmem:[%s713_s0 + $0x8] sm:$0xff]  ;;  %v29_v12 = vmul.f32 %v384_v6, %v384_v6 }
   0x3   :  { %v24_v5 = vmul.f32 %v373_v2, %v373_v2  ;;  %v27_v13 = vmul.f32 %v389_v7, %v389_v7  ;;  %v25_v14 = vmul.f32 %v397_v11, %v397_v11  ;;  %v411_v18 = vld [vmem:[%s713_s0 + $0x40] sm:$0xff]  ;;  %v416_v19 = vld [vmem:[%s713_s0 + $0x38] sm:$0xff]  ;;  %v421_v20 = vld [vmem:[%s713_s0 + $0x30] sm:$0xff] }
   0x4   :  { %v53_v8 = vsel %vm40_vm0, %v28_v3, 0.0  ;;  %v47_v9 = vsel %vm40_vm0, %v26_v4, 0.0  ;;  %v56_v15 = vsel %vm40_vm0, %v29_v12, 0.0  ;;  %v32_v21 = vmul.f32 %v411_v18, %v411_v18  ;;  %v435_v27 = vld [vmem:[%s713_s0 + $0x58] sm:$0xff]  ;;  %v440_v28 = vld [vmem:[%s713_s0 + $0x50] sm:$0xff]  ;;  %v445_v29 = vld [vmem:[%s713_s0 + $0x48] sm:$0xff] }
   0x5   :  { %v41_v10 = vsel %vm40_vm0, %v24_v5, 0.0  ;;  %54 = vadd.xlane.f32.xlu2 %v53_v8  ;;  %48 = vadd.xlane.f32.xlu1 %v47_v9  ;;  %v50_v16 = vsel %vm40_vm0, %v27_v13, 0.0  ;;  %v44_v17 = vsel %vm40_vm0, %v25_v14, 0.0  ;;  %v31_v22 = vmul.f32 %v416_v19, %v416_v19  ;;  %v459_v36 = vld [vmem:[%s713_s0 + $0x70] sm:$0xff]  ;;  %v464_v37 = vld [vmem:[%s713_s0 + $0x68] sm:$0xff]  ;;  %v469_v38 = vld [vmem:[%s713_s0 + $0x60] sm:$0xff] }
   0x6   :  { %42 = vadd.xlane.f32.xlu0 %v41_v10  ;;  %v30_v23 = vmul.f32 %v421_v20, %v421_v20  ;;  %v65_v24 = vsel %vm40_vm0, %v32_v21, 0.0  ;;  %v35_v30 = vmul.f32 %v435_v27, %v435_v27  ;;  %v34_v31 = vmul.f32 %v440_v28, %v440_v28  ;;  %v483_v45 = vld [vmem:[%s713_s0 + $0x78] sm:$0xff] }
   0x7   :  { %v62_v25 = vsel %vm40_vm0, %v31_v22, 0.0  ;;  %v33_v32 = vmul.f32 %v445_v29, %v445_v29  ;;  %v38_v39 = vmul.f32 %v459_v36, %v459_v36  ;;  %v37_v40 = vmul.f32 %v464_v37, %v464_v37 }
   0x8   :  { %v59_v26 = vsel %vm40_vm0, %v30_v23, 0.0  ;;  %v74_v33 = vsel %vm40_vm0, %v35_v30, 0.0  ;;  %v71_v34 = vsel %vm40_vm0, %v34_v31, 0.0  ;;  %v36_v41 = vmul.f32 %v469_v38, %v469_v38 }
   0x9   :  { %v68_v35 = vsel %vm40_vm0, %v33_v32, 0.0  ;;  %v83_v42 = vsel %vm40_vm0, %v38_v39, 0.0  ;;  %v80_v43 = vsel %vm40_vm0, %v37_v40, 0.0  ;;  %v39_v46 = vmul.f32 %v483_v45, %v483_v45 }
   0xa   :  { %v77_v44 = vsel %vm40_vm0, %v36_v41, 0.0 }
   0xb   :  { %v86_v47 = vsel %vm40_vm0, %v39_v46, 0.0 }
   0xd   :  { %57 = vadd.xlane.f32.xlu2 %v56_v15  ;;  %51 = vadd.xlane.f32.xlu1 %v50_v16 }
   0xe   :  { %45 = vadd.xlane.f32.xlu0 %v44_v17 }
  0x15   :  { %66 = vadd.xlane.f32.xlu2 %v65_v24  ;;  %63 = vadd.xlane.f32.xlu1 %v62_v25 }
  0x16   :  { %60 = vadd.xlane.f32.xlu0 %v59_v26 }
  0x1d   :  { %75 = vadd.xlane.f32.xlu2 %v74_v33  ;;  %72 = vadd.xlane.f32.xlu1 %v71_v34 }
  0x1e   :  { %69 = vadd.xlane.f32.xlu0 %v68_v35 }
  0x25   :  { %84 = vadd.xlane.f32.xlu2 %v83_v42  ;;  %81 = vadd.xlane.f32.xlu1 %v80_v43 }
  0x26   :  { %78 = vadd.xlane.f32.xlu0 %v77_v44 }
  0x2e   :  { %87 = vadd.xlane.f32.xlu0 %v86_v47 }
  0x78   :  { %v55_v48 = vpop.xlane.xlu2 %54  ;;  %v49_v49 = vpop.xlane.xlu1 %48 }
  0x79   :  { %v93_v50 = vmax.f32 %v55_v48, 1e-24  ;;  %v91_v51 = vmax.f32 %v49_v49, 1e-24  ;;  %v43_v52 = vpop.xlane.xlu0 %42 }
  0x7a   :  { %v89_v53 = vmax.f32 %v43_v52, 1e-24 }
  0x7b   :  { %318 = vrsqrt.f32 %v93_v50  ;;  %vm151_vm2 = vweird.f32 %v93_v50  ;;  %vm131_vm3 = vweird.f32 %v91_v51 }
  0x7c   :  { %320 = vrsqrt.f32 %v91_v51  ;;  %vm111_vm5 = vweird.f32 %v89_v53 }
  0x7d   :  { %322 = vrsqrt.f32 %v89_v53 }
  0x80   :  { %v58_v54 = vpop.xlane.xlu2 %57  ;;  %v52_v55 = vpop.xlane.xlu1 %51 }
  0x81   :  { %v319_v56 = vpop.eup %318  ;;  %v488_v57 = vmax.f32 %v58_v54, 1e-24  ;;  %v490_v58 = vmax.f32 %v52_v55, 1e-24  ;;  %v46_v59 = vpop.xlane.xlu0 %45 }
  0x82   :  { %v321_v60 = vpop.eup %320  ;;  %v146_v61 = vmul.f32 %v319_v56, %v93_v50  ;;  %v492_v62 = vmax.f32 %v46_v59, 1e-24  ;;  %vm152_vm4 = vweird.f32 %v319_v56 }
  0x83   :  { %v323_v63 = vpop.eup %322  ;;  %v126_v3 = vmul.f32 %v321_v60, %v91_v51  ;;  %324 = vrsqrt.f32 %v488_v57  ;;  %vm132_vm6 = vweird.f32 %v321_v60  ;;  %vm161_vm7 = vweird.f32 %v488_v57  ;;  %vm153_vm9 = vmor %vm151_vm2, %vm152_vm4 }
  0x84   :  { %v147_v4 = vmul.f32 %v319_v56, %v146_v61  ;;  %v106_v5 = vmul.f32 %v323_v63, %v89_v53  ;;  %326 = vrsqrt.f32 %v490_v58  ;;  %vm112_vm8 = vweird.f32 %v323_v63  ;;  %vm133_vm10 = vmor %vm131_vm3, %vm132_vm6 }
  0x85   :  { %v127_v8 = vmul.f32 %v321_v60, %v126_v3  ;;  %328 = vrsqrt.f32 %v492_v62  ;;  %vm113_vm11 = vmor %vm111_vm5, %vm112_vm8  ;;  %vm141_vm12 = vweird.f32 %v490_v58  ;;  %vm121_vm2 = vweird.f32 %v492_v62 }
  0x86   :  { %v148_v9 = vmul.f32 0.5, %v147_v4  ;;  %v107_v10 = vmul.f32 %v323_v63, %v106_v5 }
  0x87   :  { %v128_v12 = vmul.f32 0.5, %v127_v8 }
  0x88   :  { %v149_v13 = vsub.f32 1.5, %v148_v9  ;;  %v108_v14 = vmul.f32 0.5, %v107_v10  ;;  %v67_v15 = vpop.xlane.xlu2 %66  ;;  %v64_v16 = vpop.xlane.xlu1 %63 }
  0x89   :  { %v497_v17 = vpop.eup %324  ;;  %v129_v21 = vsub.f32 1.5, %v128_v12  ;;  %v500_v22 = vmax.f32 %v67_v15, 1e-24  ;;  %v61_v23 = vpop.xlane.xlu0 %60  ;;  %v513_v34 = vmax.f32 %v64_v16, 1e-24 }
  0x8a   :  { %v502_v24 = vpop.eup %326  ;;  %v150_v25 = vmul.f32 %v319_v56, %v149_v13  ;;  %v109_v26 = vsub.f32 1.5, %v108_v14  ;;  %v156_v30 = vmul.f32 %v497_v17, %v488_v57  ;;  %vm162_vm13 = vweird.f32 %v497_v17 }
  0x8b   :  { %v506_v31 = vpop.eup %328  ;;  %v130_v32 = vmul.f32 %v321_v60, %v129_v21  ;;  %v136_v33 = vmul.f32 %v502_v24, %v490_v58  ;;  %330 = vrsqrt.f32 %v500_v22  ;;  %vm142_vm14 = vweird.f32 %v502_v24  ;;  %vm163_vm0 = vmor %vm161_vm7, %vm162_vm13 }
  0x8c   :  { %v154_v35 = vsel %vm153_vm9, %v319_v56, %v150_v25  ;;  %v110_v39 = vmul.f32 %v323_v63, %v109_v26  ;;  %v157_v40 = vmul.f32 %v497_v17, %v156_v30  ;;  %v116_v41 = vmul.f32 %v506_v31, %v492_v62  ;;  %vm143_vm3 = vmor %vm141_vm12, %vm142_vm14 }
  0x8d   :  { %v269_v42 = vmul.f32 %v154_v35, %v363_v0  ;;  %v134_v43 = vsel %vm133_vm10, %v321_v60, %v130_v32  ;;  %v137_v44 = vmul.f32 %v502_v24, %v136_v33  ;;  %332 = vrsqrt.f32 %v513_v34 }
  0x8e   :  { %v267_v46 = vmul.f32 %v134_v43, %v368_v1  ;;  %v114_v47 = vsel %vm113_vm11, %v323_v63, %v110_v39  ;;  %v158_v48 = vmul.f32 0.5, %v157_v40  ;;  %v117_v49 = vmul.f32 %v506_v31, %v116_v41 }
  0x8f   :  { %v285_v50 = vpack.c.bf16 %v269_v42, %v269_v42  ;;  %v265_v51 = vmul.f32 %v114_v47, %v373_v2  ;;  %v138_v0 = vmul.f32 0.5, %v137_v44  ;;  %v537_v2 = vmax.f32 %v61_v23, 1e-24 }
  0x90   :  { %v283_v52 = vpack.c.bf16 %v267_v46, %v267_v46  ;;  %v159_v54 = vsub.f32 1.5, %v158_v48  ;;  %v118_v53 = vmul.f32 0.5, %v117_v49  ;;  %v76_v55 = vpop.xlane.xlu2 %75  ;;  %v73_v56 = vpop.xlane.xlu1 %72  ;;  %vm122_vm15 = vweird.f32 %v506_v31 }
  0x91   :  { %v530_v59 = vpop.eup %330  ;;  %302 = vst.msk [vmem:[%s714_s1 + $0x10] sm:$0xf] %vm297_vm1, %v285_v50  ;;  %v281_v1 = vpack.c.bf16 %v265_v51, %v265_v51  ;;  %v139_v60 = vsub.f32 1.5, %v138_v0  ;;  %v70_v61 = vpop.xlane.xlu0 %69  ;;  %334 = vrsqrt.f32 %v537_v2  ;;  %v558_v8 = vmax.f32 %v76_v55, 1e-24  ;;  %vm123_vm4 = vmor %vm121_vm2, %vm122_vm15 }
  0x92   :  { %300 = vst.msk [vmem:[%s714_s1 + $0x8] sm:$0xf] %vm297_vm1, %v283_v52  ;;  %v160_v63 = vmul.f32 %v497_v17, %v159_v54  ;;  %v119_v3 = vsub.f32 1.5, %v118_v53  ;;  %v186_v4 = vmul.f32 %v530_v59, %v500_v22  ;;  %v567_v12 = vmax.f32 %v73_v56, 1e-24 }
  0x93   :  { %298 = vst.msk [vmem:[%s714_s1] sm:$0xf] %vm297_vm1, %v281_v1  ;;  %v140_v5 = vmul.f32 %v502_v24, %v139_v60  ;;  %336 = vrsqrt.f32 %v558_v8  ;;  %v574_v14 = vpop.eup %332  ;;  %vm191_vm5 = vweird.f32 %v500_v22  ;;  %vm192_vm6 = vweird.f32 %v530_v59 }
  0x94   :  { %v164_v9 = vsel %vm163_vm0, %v497_v17, %v160_v63  ;;  %v120_v10 = vmul.f32 %v506_v31, %v119_v3  ;;  %v187_v57 = vmul.f32 %v530_v59, %v186_v4  ;;  %338 = vrsqrt.f32 %v567_v12  ;;  %vm193_vm7 = vmor %vm191_vm5, %vm192_vm6 }
  0x95   :  { %v270_v13 = vmul.f32 %v164_v9, %v384_v6  ;;  %v144_v62 = vsel %vm143_vm3, %v502_v24, %v140_v5  ;;  %v176_v6 = vmul.f32 %v574_v14, %v513_v34  ;;  %v584_v25 = vmax.f32 %v70_v61, 1e-24 }
  0x96   :  { %v268_v58 = vmul.f32 %v144_v62, %v389_v7  ;;  %v124_v15 = vsel %vm123_vm4, %v506_v31, %v120_v10  ;;  %v188_v16 = vmul.f32 0.5, %v187_v57  ;;  %vm181_vm8 = vweird.f32 %v513_v34 }
  0x97   :  { %v286_v17 = vpack.c.bf16 %v270_v13, %v270_v13  ;;  %v266_v21 = vmul.f32 %v124_v15, %v397_v11  ;;  %v335_v30 = vpop.eup %334  ;;  %v177_v31 = vmul.f32 %v574_v14, %v176_v6  ;;  %340 = vrsqrt.f32 %v584_v25 }
  0x98   :  { %v284_v23 = vpack.c.bf16 %v268_v58, %v268_v58  ;;  %v189_v24 = vsub.f32 1.5, %v188_v16  ;;  %v85_v7 = vpop.xlane.xlu2 %84  ;;  %v82_v26 = vpop.xlane.xlu1 %81  ;;  %v166_v35 = vmul.f32 %v335_v30, %v537_v2  ;;  %vm171_vm9 = vweird.f32 %v537_v2 }
  0x99   :  { %303 = vst.msk [vmem:[%s714_s1 + $0x14] sm:$0xf] %vm297_vm1, %v286_v17  ;;  %v282_v11 = vpack.c.bf16 %v266_v21, %v266_v21  ;;  %v591_v32 = vmax.f32 %v85_v7, 1e-24  ;;  %v600_v39 = vmax.f32 %v82_v26, 1e-24  ;;  %v602_v40 = vpop.eup %336  ;;  %v79_v42 = vpop.xlane.xlu0 %78  ;;  %vm221_vm10 = vweird.f32 %v558_v8 }
  0x9a   :  { %301 = vst.msk [vmem:[%s714_s1 + $0xc] sm:$0xf] %vm297_vm1, %v284_v23  ;;  %v190_v33 = vmul.f32 %v530_v59, %v189_v24  ;;  %v178_v41 = vmul.f32 0.5, %v177_v31  ;;  %v339_v43 = vpop.eup %338  ;;  %v167_v46 = vmul.f32 %v335_v30, %v166_v35  ;;  %v216_v47 = vmul.f32 %v602_v40, %v558_v8 }
  0x9b   :  { %299 = vst.msk [vmem:[%s714_s1 + $0x4] sm:$0xf] %vm297_vm1, %v282_v11  ;;  %342 = vrsqrt.f32 %v591_v32  ;;  %vm182_vm11 = vweird.f32 %v574_v14  ;;  %v206_v49 = vmul.f32 %v339_v43, %v567_v12  ;;  %vm211_vm12 = vweird.f32 %v567_v12 }
  0x9c   :  { %v194_v44 = vsel %vm193_vm7, %v530_v59, %v190_v33  ;;  %v179_v48 = vsub.f32 1.5, %v178_v41  ;;  %v168_v50 = vmul.f32 0.5, %v167_v46  ;;  %v217_v51 = vmul.f32 %v602_v40, %v216_v47  ;;  %vm183_vm13 = vmor %vm181_vm8, %vm182_vm11 }
  0x9d   :  { %v273_v22 = vmul.f32 %v194_v44, %v411_v18  ;;  %344 = vrsqrt.f32 %v600_v39  ;;  %v207_v54 = vmul.f32 %v339_v43, %v206_v49  ;;  %v626_v53 = vmax.f32 %v79_v42, 1e-24  ;;  %v628_v55 = vpop.eup %340 }
  0x9e   :  { %v180_v52 = vmul.f32 %v574_v14, %v179_v48  ;;  %v169_v18 = vsub.f32 1.5, %v168_v50  ;;  %vm172_vm14 = vweird.f32 %v335_v30  ;;  %v218_v56 = vmul.f32 0.5, %v217_v51 }
  0x9f   :  { %v289_v0 = vpack.c.bf16 %v273_v22, %v273_v22  ;;  %vm251_vm15 = vweird.f32 %v591_v32  ;;  %vm222_vm0 = vweird.f32 %v602_v40  ;;  %v208_v60 = vmul.f32 0.5, %v207_v54  ;;  %vm173_vm2 = vmor %vm171_vm9, %vm172_vm14 }
  0xa0   :  { %v184_v1 = vsel %vm183_vm13, %v574_v14, %v180_v52  ;;  %v196_v34 = vmul.f32 %v628_v55, %v584_v25  ;;  %v170_v63 = vmul.f32 %v335_v30, %v169_v18  ;;  %v219_v3 = vsub.f32 1.5, %v218_v56  ;;  %vm223_vm4 = vmor %vm221_vm10, %vm222_vm0 }
  0xa1   :  { %v343_v59 = vpop.eup %342  ;;  %306 = vst.msk [vmem:[%s714_s1 + $0x20] sm:$0xf] %vm297_vm1, %v289_v0  ;;  %v272_v61 = vmul.f32 %v184_v1, %v416_v19  ;;  %v209_v5 = vsub.f32 1.5, %v208_v60  ;;  %vm212_vm3 = vweird.f32 %v339_v43  ;;  %346 = vrsqrt.f32 %v626_v53  ;;  %v88_v16 = vpop.xlane.xlu0 %87 }
  0xa2   :  { %v246_v4 = vmul.f32 %v343_v59, %v591_v32  ;;  %v197_v9 = vmul.f32 %v628_v55, %v196_v34  ;;  %v174_v13 = vsel %vm173_vm2, %v335_v30, %v170_v63  ;;  %v220_v62 = vmul.f32 %v602_v40, %v219_v3  ;;  %vm213_vm5 = vmor %vm211_vm12, %vm212_vm3 }
  0xa3   :  { %v345_v10 = vpop.eup %344  ;;  %v288_v57 = vpack.c.bf16 %v272_v61, %v272_v61  ;;  %v271_v19 = vmul.f32 %v174_v13, %v421_v20  ;;  %v210_v2 = vmul.f32 %v339_v43, %v209_v5  ;;  %vm202_vm6 = vweird.f32 %v628_v55 }
  0xa4   :  { %v247_v14 = vmul.f32 %v343_v59, %v246_v4  ;;  %v198_v58 = vmul.f32 0.5, %v197_v9  ;;  %v236_v15 = vmul.f32 %v345_v10, %v600_v39  ;;  %v224_v17 = vsel %vm223_vm4, %v602_v40, %v220_v62 }
  0xa5   :  { %305 = vst.msk [vmem:[%s714_s1 + $0x1c] sm:$0xf] %vm297_vm1, %v288_v57  ;;  %vm252_vm7 = vweird.f32 %v343_v59  ;;  %v287_v8 = vpack.c.bf16 %v271_v19, %v271_v19  ;;  %v276_v21 = vmul.f32 %v224_v17, %v435_v27  ;;  %v214_v6 = vsel %vm213_vm5, %v339_v43, %v210_v2 }
  0xa6   :  { %v248_v20 = vmul.f32 0.5, %v247_v14  ;;  %v199_v23 = vsub.f32 1.5, %v198_v58  ;;  %v275_v24 = vmul.f32 %v214_v6, %v440_v28  ;;  %v237_v26 = vmul.f32 %v345_v10, %v236_v15  ;;  %vm253_vm10 = vmor %vm251_vm15, %vm252_vm7 }
  0xa7   :  { %v104_v30 = vmax.f32 %v88_v16, 1e-24  ;;  %v347_v11 = vpop.eup %346  ;;  %304 = vst.msk [vmem:[%s714_s1 + $0x18] sm:$0xf] %vm297_vm1, %v287_v8  ;;  %v292_v12 = vpack.c.bf16 %v276_v21, %v276_v21  ;;  %vm201_vm8 = vweird.f32 %v584_v25  ;;  %vm241_vm11 = vweird.f32 %v600_v39 }
  0xa8   :  { %v249_v7 = vsub.f32 1.5, %v248_v20  ;;  %v200_v31 = vmul.f32 %v628_v55, %v199_v23  ;;  %v291_v33 = vpack.c.bf16 %v275_v24, %v275_v24  ;;  %vm203_vm9 = vmor %vm201_vm8, %vm202_vm6  ;;  %v238_v28 = vmul.f32 0.5, %v237_v26 }
  0xa9   :  { %v226_v35 = vmul.f32 %v347_v11, %v626_v53  ;;  %309 = vst.msk [vmem:[%s714_s1 + $0x2c] sm:$0xf] %vm297_vm1, %v292_v12  ;;  %vm242_vm12 = vweird.f32 %v345_v10  ;;  %348 = vrsqrt.f32 %v104_v30  ;;  %vm232_vm14 = vweird.f32 %v347_v11 }
  0xaa   :  { %v250_v27 = vmul.f32 %v343_v59, %v249_v7  ;;  %v204_v40 = vsel %vm203_vm9, %v628_v55, %v200_v31  ;;  %308 = vst.msk [vmem:[%s714_s1 + $0x28] sm:$0xf] %vm297_vm1, %v291_v33  ;;  %v239_v42 = vsub.f32 1.5, %v238_v28  ;;  %vm243_vm13 = vmor %vm241_vm11, %vm242_vm12  ;;  %vm231_vm15 = vweird.f32 %v626_v53 }
  0xab   :  { %v274_v25 = vmul.f32 %v204_v40, %v445_v29  ;;  %v227_v43 = vmul.f32 %v347_v11, %v226_v35  ;;  %vm233_vm0 = vmor %vm231_vm15, %vm232_vm14  ;;  %vm261_vm3 = vweird.f32 %v104_v30 }
  0xac   :  { %v254_v41 = vsel %vm253_vm10, %v343_v59, %v250_v27  ;;  %v240_v47 = vmul.f32 %v345_v10, %v239_v42 }
  0xad   :  { %v279_v44 = vmul.f32 %v254_v41, %v459_v36  ;;  %v290_v46 = vpack.c.bf16 %v274_v25, %v274_v25  ;;  %v228_v32 = vmul.f32 0.5, %v227_v43 }
  0xae   :  { %v244_v39 = vsel %vm243_vm13, %v345_v10, %v240_v47 }
  0xaf   :  { %v295_v22 = vpack.c.bf16 %v279_v44, %v279_v44  ;;  %307 = vst.msk [vmem:[%s714_s1 + $0x24] sm:$0xf] %vm297_vm1, %v290_v46  ;;  %v229_v48 = vsub.f32 1.5, %v228_v32  ;;  %v349_v49 = vpop.eup %348  ;;  %v278_v29 = vmul.f32 %v244_v39, %v464_v37 }
  0xb0   :  { %v256_v50 = vmul.f32 %v349_v49, %v104_v30  ;;  %vm262_vm2 = vweird.f32 %v349_v49 }
  0xb1   :  { %312 = vst.msk [vmem:[%s714_s1 + $0x38] sm:$0xf] %vm297_vm1, %v295_v22  ;;  %v230_v36 = vmul.f32 %v347_v11, %v229_v48  ;;  %v294_v51 = vpack.c.bf16 %v278_v29, %v278_v29  ;;  %vm263_vm4 = vmor %vm261_vm3, %vm262_vm2 }
  0xb2   :  { %v257_v52 = vmul.f32 %v349_v49, %v256_v50 }
  0xb3   :  { %v234_v0 = vsel %vm233_vm0, %v347_v11, %v230_v36  ;;  %311 = vst.msk [vmem:[%s714_s1 + $0x34] sm:$0xf] %vm297_vm1, %v294_v51 }
  0xb4   :  { %v277_v54 = vmul.f32 %v234_v0, %v469_v38  ;;  %v258_v55 = vmul.f32 0.5, %v257_v52 }
  0xb6   :  { %v293_v18 = vpack.c.bf16 %v277_v54, %v277_v54  ;;  %v259_v56 = vsub.f32 1.5, %v258_v55 }
  0xb8   :  { %310 = vst.msk [vmem:[%s714_s1 + $0x30] sm:$0xf] %vm297_vm1, %v293_v18  ;;  %v260_v37 = vmul.f32 %v349_v49, %v259_v56 }
  0xba   :  { %v264_v53 = vsel %vm263_vm4, %v349_v49, %v260_v37 }
  0xbb   :  { %v280_v59 = vmul.f32 %v264_v53, %v483_v45 }
  0xbd   :  { %v296_v1 = vpack.c.bf16 %v280_v59, %v280_v59 }
  0xbf   :  { %313 = vst.msk [vmem:[%s714_s1 + $0x3c] sm:$0xf] %vm297_vm1, %v296_v1 }

</bundles_post_ra>
